<compile_context>
chip_gen: v5e
topology: v5e:2x2
jax: 0.10.0
libtpu: 0.0.40
codegen_flags: <defaults>
</compile_context>

<pallas_src>
import functools

import numpy as np

import jax
import jax.numpy as jnp
from jax.experimental import pallas as pl
from jax.experimental.pallas import tpu as pltpu


def _pc_conv_kernel(xflat_ref, w_ref, b_ref, mask_ref, o_ref, ss_ref, patch_ref,
                    *, KH, KW, stride, Cin, Wp, SLAB, SLABP, TB, precision):
    """Conv-as-GEMM for TB images + masked global-norm partials.

    xflat_ref : (TB, s*s*Cin, Hp*Wp + pad)  per-phase flattened planes
    w_ref     : (Cout, K)                   conv weight as GEMM LHS
    b_ref     : (Cout, 1)                   bias (lane broadcast)
    mask_ref  : (1, TB*SLABP)               1.0 on valid output columns
    o_ref     : (TB, Cout, SLABP)           un-squashed conv (lane-dense store)
    ss_ref    : (Cout, 1)                   per-step sum-of-squares partials
    patch_ref : VMEM scratch (K, TB*SLABP)  on-chip im2col block
    """
    s = stride
    # ---- in-VMEM im2col: ONE contiguous slab copy per (image, tap) ---------
    # Thanks to the flattened per-phase plane, tap (kh, kw) is simply the
    # contiguous lane range [start, start+OH*Wp) of its stride-phase plane.
    for tb in range(TB):
        base = tb * SLABP
        for kh in range(KH):
            for kw in range(KW):
                t = kh * KW + kw
                ph = (kh % s) * s + (kw % s)          # stride phase of this tap
                start = (kh // s) * Wp + (kw // s)    # lane offset in the plane
                patch_ref[t * Cin:(t + 1) * Cin, base:base + SLAB] = \
                    xflat_ref[tb, ph * Cin:(ph + 1) * Cin, start:start + SLAB]

    # ---- one MXU GEMM per step: (Cout, K) @ (K, TB*SLABP), N lane-dense ----
    acc = jnp.dot(w_ref[...], patch_ref[...],
                  preferred_element_type=jnp.float32, precision=precision)
    acc = acc + b_ref[...]                            # single (Cout,1) broadcast

    # ---- partial reduction for the *global* squash norm (f32, masked) ------
    sq = jnp.where(mask_ref[...] > 0.5, acc * acc, 0.0)
    ss_ref[...] = jnp.sum(sq, axis=1, keepdims=True)

    # ---- full-lane (128-aligned) output stores, in the output dtype --------
    for tb in range(TB):
        o_ref[tb] = acc[:, tb * SLABP:(tb + 1) * SLABP].astype(o_ref.dtype)


def _pick_tb(batch, slabp, max_lanes=2048):
    """Largest batch block TB | B with TB*SLABP <= max_lanes and >=2 grid steps."""
    best = 1
    for tb in range(1, batch + 1):
        if batch % tb:
            continue
        if tb * slabp > max_lanes:
            continue
        if batch >= 2 and batch // tb < 2:            # keep >=2 steps (v7x megacore)
            continue
        best = tb
    return best


@functools.partial(jax.jit, static_argnames=("stride", "capsule_dimensions"))
def primary_capsule_forward(x_nchw, w_oihw, bias, *, stride, capsule_dimensions):
    """Forward pass of Primary_capsule.  x is NCHW (PyTorch convention)."""
    B, Cin, H, W = x_nchw.shape
    Cout, Cin_w, KH, KW = w_oihw.shape
    assert Cin == Cin_w
    s = stride
    OH = (H - KH) // s + 1
    OW = (W - KW) // s + 1
    Hp = -(-H // s)
    Wp = -(-W // s)
    K = KH * KW * Cin
    SLAB = OH * Wp                                    # columns written per image
    SLABP = ((SLAB + 127) // 128) * 128               # 128-aligned column stride
    max_dw = (KW - 1) // s                            # tail pad for the last taps
    L = Hp * Wp + max_dw
    TB = _pick_tb(B, SLABP)
    nb = B // TB

    # ---- glue: space-to-depth + per-phase spatial flatten (1x input bytes) --
    # xflat[b, ph*Cin + ci, i*Wp + j] == x[b, ci, i*s + hp, j*s + wp],
    # with ph = hp*s + wp.  Every tap read inside the kernel is then a single
    # contiguous (Cin, OH*Wp) slice of this array.
    pad_h = Hp * s - H
    pad_w = Wp * s - W
    xp = x_nchw
    if pad_h or pad_w:
        xp = jnp.pad(xp, ((0, 0), (0, 0), (0, pad_h), (0, pad_w)))
    xflat = (xp.reshape(B, Cin, Hp, s, Wp, s)
               .transpose(0, 3, 5, 1, 2, 4)           # (B, s, s, Cin, Hp, Wp)
               .reshape(B, s * s * Cin, Hp * Wp))
    if max_dw:
        xflat = jnp.pad(xflat, ((0, 0), (0, 0), (0, max_dw)))
    xflat = xflat.astype(x_nchw.dtype)

    # Weight as GEMM LHS; row index = (kh*KW + kw)*Cin + ci (matches patch_ref).
    w_mat = jnp.transpose(w_oihw, (0, 2, 3, 1)).reshape(Cout, K).astype(x_nchw.dtype)
    b_col = bias.reshape(Cout, 1).astype(jnp.float32)

    # Valid-column mask (compile-time constant, passed as a tiny input).
    mask_np = np.zeros((1, TB * SLABP), np.float32)
    for tb in range(TB):
        for oh in range(OH):
            c0 = tb * SLABP + oh * Wp
            mask_np[0, c0:c0 + OW] = 1.0
    mask = jnp.asarray(mask_np)

    precision = (jax.lax.Precision.HIGHEST if x_nchw.dtype == jnp.float32
                 else jax.lax.Precision.DEFAULT)

    kernel = functools.partial(
        _pc_conv_kernel, KH=KH, KW=KW, stride=s, Cin=Cin, Wp=Wp,
        SLAB=SLAB, SLABP=SLABP, TB=TB, precision=precision)

    conv_pad, ss = pl.pallas_call(
        kernel,
        grid=(nb,),
        out_shape=(
            jax.ShapeDtypeStruct((B, Cout, SLABP), x_nchw.dtype),   # conv (padded)
            jax.ShapeDtypeStruct((nb, Cout, 1), jnp.float32),       # sumsq partials
        ),
        in_specs=[
            pl.BlockSpec((TB, s * s * Cin, L), lambda i: (i, 0, 0)),
            pl.BlockSpec((Cout, K), lambda i: (0, 0)),
            pl.BlockSpec((Cout, 1), lambda i: (0, 0)),
            pl.BlockSpec((1, TB * SLABP), lambda i: (0, 0)),
        ],
        out_specs=(
            pl.BlockSpec((TB, Cout, SLABP), lambda i: (i, 0, 0)),
            pl.BlockSpec((None, Cout, 1), lambda i: (i, 0, 0)),
        ),
        scratch_shapes=[pltpu.VMEM((K, TB * SLABP), x_nchw.dtype)],
        compiler_params=pltpu.CompilerParams(
            dimension_semantics=("parallel",),
            vmem_limit_bytes=32 * 1024 * 1024),
    )(xflat, w_mat, b_col, mask)

    # ---- global squash factor (scalar, applied by XLA; fuses with reshape) --
    total = jnp.sum(ss)                               # whole-tensor sum of squares
    norm = jnp.sqrt(total)
    squared_norm = norm * norm
    safe_norm = norm + 1e-07
    factor = (squared_norm / (1.0 + squared_norm)) / safe_norm

    # Drop the alignment padding: valid column c = oh*Wp + ow with ow < OW.
    conv = conv_pad[:, :, :SLAB].reshape(B, Cout, OH, Wp)[:, :, :, :OW]
    out = (conv.astype(jnp.float32) * factor).astype(x_nchw.dtype)
    # (B, Cout, OH, OW) is PyTorch's NCHW flatten order -> capsule view.
    return out.reshape(B, -1, capsule_dimensions)


def _reference_forward(x_nchw, w_oihw, bias, *, stride, capsule_dimensions):
    """Pure-JAX/XLA reference of the PyTorch module (for validation)."""
    B = x_nchw.shape[0]
    Cout = w_oihw.shape[0]
    conv = jax.lax.conv_general_dilated(
        x_nchw, w_oihw, window_strides=(stride, stride), padding="VALID",
        dimension_numbers=("NCHW", "OIHW", "NCHW"),
        precision=jax.lax.Precision.HIGHEST,
    ) + bias.reshape(1, Cout, 1, 1)
    norm = jnp.sqrt(jnp.sum(conv * conv))
    squared_norm = norm * norm
    safe_norm = norm + 1e-07
    squashed = (squared_norm / (1.0 + squared_norm)) * (conv / safe_norm)
    return squashed.reshape(B, -1, capsule_dimensions)


if __name__ == "__main__":
    # Module config (small, consistent with Primary_capsule.__init__):
    in_dimension = 4
    out_dimension = 8
    capsule_dimensions = 4
    kernel_size = 3
    stride = 2

    key = jax.random.PRNGKey(0)
    kx, kw, kb = jax.random.split(key, 3)

    x = jax.random.normal(kx, (2, in_dimension, 16, 16), dtype=jnp.float32)
    w = 0.1 * jax.random.normal(
        kw, (out_dimension, in_dimension, kernel_size, kernel_size),
        dtype=jnp.float32)
    b = 0.1 * jax.random.normal(kb, (out_dimension,), dtype=jnp.float32)

    out = primary_capsule_forward(
        x, w, b, stride=stride, capsule_dimensions=capsule_dimensions)
    out = jax.block_until_ready(out)

    ref = _reference_forward(
        x, w, b, stride=stride, capsule_dimensions=capsule_dimensions)

    assert out.shape == (2, (out_dimension * 7 * 7) // capsule_dimensions,
                         capsule_dimensions), out.shape
    assert jnp.allclose(out, ref, atol=1e-4, rtol=1e-3), float(
        jnp.max(jnp.abs(out - ref)))

    print("KERNEL_OK")
</pallas_src>

<mosaic_0001>
module attributes {stable_mosaic.version = 11 : i64} {
  func.func @_pc_conv_kernel(%arg0: i32, %arg1: memref<1x16x65xf32, #tpu.memory_space<vmem>>, %arg2: memref<8x36xf32, #tpu.memory_space<vmem>>, %arg3: memref<8x1xf32, #tpu.memory_space<vmem>>, %arg4: memref<1x128xf32, #tpu.memory_space<vmem>>, %arg5: memref<1x8x128xf32, #tpu.memory_space<vmem>>, %arg6: memref<1x8x1xf32, #tpu.memory_space<vmem>>, %arg7: memref<36x128xf32, #tpu.memory_space<vmem>>) attributes {dimension_semantics = [#tpu.dimension_semantics<parallel>], iteration_bounds = array<i64: 2>, scalar_prefetch = 0 : i64, scratch_operands = 1 : i64, tpu.core_type = #tpu.core_type<tc>, window_params = [{transform_indices = @transform_0, window_bounds = array<i64: 1, 16, 65>}, {pipeline_mode = #tpu.pipeline_mode<synchronous>, transform_indices = @transform_1, window_bounds = array<i64: 8, 36>}, {pipeline_mode = #tpu.pipeline_mode<synchronous>, transform_indices = @transform_2, window_bounds = array<i64: 8, 1>}, {pipeline_mode = #tpu.pipeline_mode<synchronous>, transform_indices = @transform_3, window_bounds = array<i64: 1, 128>}, {transform_indices = @transform_4, window_bounds = array<i64: 1, 8, 128>}, {transform_indices = @transform_5, window_bounds = array<i64: 1, 8, 1>}]} {
    %c0 = arith.constant 0 : index
    %c0_0 = arith.constant 0 : index
    %c0_1 = arith.constant 0 : index
    %0 = vector.load %arg1[%c0, %c0_0, %c0_1] : memref<1x16x65xf32, #tpu.memory_space<vmem>>, vector<1x4x56xf32>
    %1 = vector.shape_cast %0 : vector<1x4x56xf32> to vector<4x56xf32>
    %c0_2 = arith.constant 0 : index
    %c0_3 = arith.constant 0 : index
    %2 = vector.load %arg7[%c0_2, %c0_3] : memref<36x128xf32, #tpu.memory_space<vmem>>, vector<4x56xf32>
    tpu.vector_store %arg7[%c0_2, %c0_3], %1 {strides = array<i32>} : memref<36x128xf32, #tpu.memory_space<vmem>>, vector<4x56xf32>,
    %c0_4 = arith.constant 0 : index
    %c4 = arith.constant 4 : index
    %c0_5 = arith.constant 0 : index
    %3 = vector.load %arg1[%c0_4, %c4, %c0_5] : memref<1x16x65xf32, #tpu.memory_space<vmem>>, vector<1x4x56xf32>
    %4 = vector.shape_cast %3 : vector<1x4x56xf32> to vector<4x56xf32>
    %c4_6 = arith.constant 4 : index
    %c0_7 = arith.constant 0 : index
    %5 = vector.load %arg7[%c4_6, %c0_7] : memref<36x128xf32, #tpu.memory_space<vmem>>, vector<4x56xf32>
    tpu.vector_store %arg7[%c4_6, %c0_7], %4 {strides = array<i32>} : memref<36x128xf32, #tpu.memory_space<vmem>>, vector<4x56xf32>,
    %c0_8 = arith.constant 0 : index
    %c0_9 = arith.constant 0 : index
    %c1 = arith.constant 1 : index
    %6 = vector.load %arg1[%c0_8, %c0_9, %c1] : memref<1x16x65xf32, #tpu.memory_space<vmem>>, vector<1x4x56xf32>
    %7 = vector.shape_cast %6 : vector<1x4x56xf32> to vector<4x56xf32>
    %c8 = arith.constant 8 : index
    %c0_10 = arith.constant 0 : index
    %8 = vector.load %arg7[%c8, %c0_10] : memref<36x128xf32, #tpu.memory_space<vmem>>, vector<4x56xf32>
    tpu.vector_store %arg7[%c8, %c0_10], %7 {strides = array<i32>} : memref<36x128xf32, #tpu.memory_space<vmem>>, vector<4x56xf32>,
    %c0_11 = arith.constant 0 : index
    %c8_12 = arith.constant 8 : index
    %c0_13 = arith.constant 0 : index
    %9 = vector.load %arg1[%c0_11, %c8_12, %c0_13] : memref<1x16x65xf32, #tpu.memory_space<vmem>>, vector<1x4x56xf32>
    %10 = vector.shape_cast %9 : vector<1x4x56xf32> to vector<4x56xf32>
    %c12 = arith.constant 12 : index
    %c0_14 = arith.constant 0 : index
    %11 = vector.load %arg7[%c12, %c0_14] : memref<36x128xf32, #tpu.memory_space<vmem>>, vector<4x56xf32>
    tpu.vector_store %arg7[%c12, %c0_14], %10 {strides = array<i32>} : memref<36x128xf32, #tpu.memory_space<vmem>>, vector<4x56xf32>,
    %c0_15 = arith.constant 0 : index
    %c12_16 = arith.constant 12 : index
    %c0_17 = arith.constant 0 : index
    %12 = vector.load %arg1[%c0_15, %c12_16, %c0_17] : memref<1x16x65xf32, #tpu.memory_space<vmem>>, vector<1x4x56xf32>
    %13 = vector.shape_cast %12 : vector<1x4x56xf32> to vector<4x56xf32>
    %c16 = arith.constant 16 : index
    %c0_18 = arith.constant 0 : index
    %14 = vector.load %arg7[%c16, %c0_18] : memref<36x128xf32, #tpu.memory_space<vmem>>, vector<4x56xf32>
    tpu.vector_store %arg7[%c16, %c0_18], %13 {strides = array<i32>} : memref<36x128xf32, #tpu.memory_space<vmem>>, vector<4x56xf32>,
    %c0_19 = arith.constant 0 : index
    %c8_20 = arith.constant 8 : index
    %c1_21 = arith.constant 1 : index
    %15 = vector.load %arg1[%c0_19, %c8_20, %c1_21] : memref<1x16x65xf32, #tpu.memory_space<vmem>>, vector<1x4x56xf32>
    %16 = vector.shape_cast %15 : vector<1x4x56xf32> to vector<4x56xf32>
    %c20 = arith.constant 20 : index
    %c0_22 = arith.constant 0 : index
    %17 = vector.load %arg7[%c20, %c0_22] : memref<36x128xf32, #tpu.memory_space<vmem>>, vector<4x56xf32>
    tpu.vector_store %arg7[%c20, %c0_22], %16 {strides = array<i32>} : memref<36x128xf32, #tpu.memory_space<vmem>>, vector<4x56xf32>,
    %c0_23 = arith.constant 0 : index
    %c0_24 = arith.constant 0 : index
    %c8_25 = arith.constant 8 : index
    %18 = vector.load %arg1[%c0_23, %c0_24, %c8_25] : memref<1x16x65xf32, #tpu.memory_space<vmem>>, vector<1x4x56xf32>
    %19 = vector.shape_cast %18 : vector<1x4x56xf32> to vector<4x56xf32>
    %c24 = arith.constant 24 : index
    %c0_26 = arith.constant 0 : index
    %20 = vector.load %arg7[%c24, %c0_26] : memref<36x128xf32, #tpu.memory_space<vmem>>, vector<4x56xf32>
    tpu.vector_store %arg7[%c24, %c0_26], %19 {strides = array<i32>} : memref<36x128xf32, #tpu.memory_space<vmem>>, vector<4x56xf32>,
    %c0_27 = arith.constant 0 : index
    %c4_28 = arith.constant 4 : index
    %c8_29 = arith.constant 8 : index
    %21 = vector.load %arg1[%c0_27, %c4_28, %c8_29] : memref<1x16x65xf32, #tpu.memory_space<vmem>>, vector<1x4x56xf32>
    %22 = vector.shape_cast %21 : vector<1x4x56xf32> to vector<4x56xf32>
    %c28 = arith.constant 28 : index
    %c0_30 = arith.constant 0 : index
    %23 = vector.load %arg7[%c28, %c0_30] : memref<36x128xf32, #tpu.memory_space<vmem>>, vector<4x56xf32>
    tpu.vector_store %arg7[%c28, %c0_30], %22 {strides = array<i32>} : memref<36x128xf32, #tpu.memory_space<vmem>>, vector<4x56xf32>,
    %c0_31 = arith.constant 0 : index
    %c0_32 = arith.constant 0 : index
    %c9 = arith.constant 9 : index
    %24 = vector.load %arg1[%c0_31, %c0_32, %c9] : memref<1x16x65xf32, #tpu.memory_space<vmem>>, vector<1x4x56xf32>
    %25 = vector.shape_cast %24 : vector<1x4x56xf32> to vector<4x56xf32>
    %c32 = arith.constant 32 : index
    %c0_33 = arith.constant 0 : index
    %26 = vector.load %arg7[%c32, %c0_33] : memref<36x128xf32, #tpu.memory_space<vmem>>, vector<4x56xf32>
    tpu.vector_store %arg7[%c32, %c0_33], %25 {strides = array<i32>} : memref<36x128xf32, #tpu.memory_space<vmem>>, vector<4x56xf32>,
    %c0_34 = arith.constant 0 : index
    %c0_35 = arith.constant 0 : index
    %27 = vector.load %arg2[%c0_34, %c0_35] : memref<8x36xf32, #tpu.memory_space<vmem>>, vector<8x36xf32>
    %c0_36 = arith.constant 0 : index
    %c0_37 = arith.constant 0 : index
    %28 = vector.load %arg7[%c0_36, %c0_37] : memref<36x128xf32, #tpu.memory_space<vmem>>, vector<36x128xf32>
    %cst = arith.constant dense<0.000000e+00> : vector<8x128xf32>
    %29 = tpu.matmul %27, %28, %cst {dimension_numbers = #tpu.dot_dimension_numbers<[1], [0], [0], [1], [0, 0, 1, 1], [], []>, precision = #tpu.contract_precision<fp32>} : vector<8x36xf32>, vector<36x128xf32>, vector<8x128xf32> -> vector<8x128xf32>
    %c0_38 = arith.constant 0 : index
    %c0_39 = arith.constant 0 : index
    %30 = vector.load %arg3[%c0_38, %c0_39] : memref<8x1xf32, #tpu.memory_space<vmem>>, vector<8x1xf32>
    %31 = vector.broadcast %30 : vector<8x1xf32> to vector<8x128xf32>
    %32 = arith.addf %29, %31 : vector<8x128xf32>
    %c0_40 = arith.constant 0 : index
    %c0_41 = arith.constant 0 : index
    %33 = vector.load %arg4[%c0_40, %c0_41] : memref<1x128xf32, #tpu.memory_space<vmem>>, vector<1x128xf32>
    %cst_42 = arith.constant 5.000000e-01 : f32
    %34 = vector.broadcast %cst_42 : f32 to vector<1x128xf32>
    %35 = arith.cmpf ogt, %33, %34 : vector<1x128xf32>
    %36 = arith.mulf %32, %32 : vector<8x128xf32>
    %cst_43 = arith.constant 0.000000e+00 : f32
    %37 = vector.shape_cast %35 : vector<1x128xi1> to vector<1x128xi1>
    %38 = vector.broadcast %37 : vector<1x128xi1> to vector<8x128xi1>
    %39 = vector.broadcast %cst_43 : f32 to vector<8x128xf32>
    %40 = arith.select %38, %36, %39 : vector<8x128xi1>, vector<8x128xf32>
    %cst_44 = arith.constant dense<0.000000e+00> : vector<8xf32>
    %41 = vector.multi_reduction <add>, %40, %cst_44 [1] : vector<8x128xf32> to vector<8xf32>
    %42 = vector.shape_cast %41 : vector<8xf32> to vector<8x1xf32>
    %c0_45 = arith.constant 0 : index
    %c0_46 = arith.constant 0 : index
    %c0_47 = arith.constant 0 : index
    %43 = vector.load %arg6[%c0_45, %c0_46, %c0_47] : memref<1x8x1xf32, #tpu.memory_space<vmem>>, vector<1x8x1xf32>
    %44 = vector.shape_cast %43 : vector<1x8x1xf32> to vector<8x1xf32>
    %45 = vector.shape_cast %42 : vector<8x1xf32> to vector<1x8x1xf32>
    tpu.vector_store %arg6[%c0_45, %c0_46, %c0_47], %45 {strides = array<i32>} : memref<1x8x1xf32, #tpu.memory_space<vmem>>, vector<1x8x1xf32>,
    %c0_48 = arith.constant 0 : index
    %c0_49 = arith.constant 0 : index
    %c0_50 = arith.constant 0 : index
    %46 = vector.load %arg5[%c0_48, %c0_49, %c0_50] : memref<1x8x128xf32, #tpu.memory_space<vmem>>, vector<1x8x128xf32>
    %47 = vector.shape_cast %46 : vector<1x8x128xf32> to vector<8x128xf32>
    %48 = vector.shape_cast %32 : vector<8x128xf32> to vector<1x8x128xf32>
    tpu.vector_store %arg5[%c0_48, %c0_49, %c0_50], %48 {strides = array<i32>} : memref<1x8x128xf32, #tpu.memory_space<vmem>>, vector<1x8x128xf32>,
    return
  }
  func.func @transform_0(%arg0: i32) -> (i32, i32, i32) {
    %c0_i32 = arith.constant 0 : i32
    %c0_i32_0 = arith.constant 0 : i32
    %c0_i32_1 = arith.constant 0 : i32
    return %arg0, %c0_i32, %c0_i32_0 : i32, i32, i32
  }
  func.func @transform_1(%arg0: i32) -> (i32, i32) {
    %c0_i32 = arith.constant 0 : i32
    %c0_i32_0 = arith.constant 0 : i32
    %c0_i32_1 = arith.constant 0 : i32
    return %c0_i32, %c0_i32_0 : i32, i32
  }
  func.func @transform_2(%arg0: i32) -> (i32, i32) {
    %c0_i32 = arith.constant 0 : i32
    %c0_i32_0 = arith.constant 0 : i32
    %c0_i32_1 = arith.constant 0 : i32
    return %c0_i32, %c0_i32_0 : i32, i32
  }
  func.func @transform_3(%arg0: i32) -> (i32, i32) {
    %c0_i32 = arith.constant 0 : i32
    %c0_i32_0 = arith.constant 0 : i32
    %c0_i32_1 = arith.constant 0 : i32
    return %c0_i32, %c0_i32_0 : i32, i32
  }
  func.func @transform_4(%arg0: i32) -> (i32, i32, i32) {
    %c0_i32 = arith.constant 0 : i32
    %c0_i32_0 = arith.constant 0 : i32
    %c0_i32_1 = arith.constant 0 : i32
    return %arg0, %c0_i32, %c0_i32_0 : i32, i32, i32
  }
  func.func @transform_5(%arg0: i32) -> (i32, i32, i32) {
    %c0_i32 = arith.constant 0 : i32
    %c0_i32_0 = arith.constant 0 : i32
    %c0_i32_1 = arith.constant 0 : i32
    return %arg0, %c0_i32, %c0_i32_0 : i32, i32, i32
  }
}

</mosaic_0001>

<bundles_post_ra>
// kernel: primary_capsule_forward.1
= control target key start
LH: loop header
LB: loop body
LE: loop exit
PB: predicated region body
PF: predicated region fallthrough
CT: control target
= control target key end

     0   :  { %s655_s18 = smov 0   ;;  %s724_s0 = inlined_call_operand.vmem [shape: f32[2,16,65], index: 0, kind: input, shape index: {}]   ;;  %s725_s1 = inlined_call_operand.vmem [shape: f32[8,36], index: 1, kind: input, shape index: {}]   ;;  %s726_s2 = inlined_call_operand.vmem [shape: f32[8,1], index: 2, kind: input, shape index: {}]   ;;  %s727_s3 = inlined_call_operand.vmem [shape: f32[1,128], index: 3, kind: input, shape index: {}]   ;;  %s728_s4 = inlined_call_operand.vmem [shape: f32[2,8,128], index: 4, kind: output, shape index: {0}]   ;;  %s729_s5 = inlined_call_operand.vmem [shape: f32[2,8,1], index: 5, kind: output, shape index: {1}]  }
   0x1 LB: > { %s587_s19 = sadd.s32 4294967295, %s619_s18   ;;  %p591_p0 = scmp.ge.s32.totalorder %s619_s18, 1  ;;  %s619_s18 = sphi %s655_s18, %s16_s18  }
   0x2   : > { %p190_p1 = scmp.lt.s32.totalorder %s619_s18, 3 }
   0x4   : > { %p191_p2 = pnand %p591_p0, %p190_p1 }
   0x5   : > { %p221_p3 = scmp.lt.s32.totalorder (!%p191_p2), %s587_s19, 1  ;;  %s621_s24 = smov (!%p191_p2), 119  }
   0x6   : > { %194 = sbr.rel (%p191_p2) target bundleno = 422 (0x1a6), region = 36  ;;  %s622_s25 = smov (!%p191_p2), 120  }
   0x7   : > { %s623_s26 = smov (!%p191_p2), 127  }
   0xb   : > { %s731_s19 = smov (!%p221_p3, %s587_s19), 1  ;;  %vm235_vm0 = vcmask 453632   ;;  %v273_v12 = vld [vmem:[%s725_s1] sm:$0xff]  ;;  %vm285_vm1 = vcmask 293888   ;;  %vm289_vm2 = vcmask 1043456   ;;  %v624_v27 = vmov 0  }
   0xc   : > { %s598_s20 = sshll.u32 %s731_s19, 4  ;;  %v287_v13 = vsel %vm285_vm1, %v273_v12, 0  ;;  %v279_v22 = vld [vmem:[%s726_s2] sm:$0xff]  ;;  %611 = vset.pattern.permute.xlu2 %v624_v27  ;;  %612 = vset.pattern.permute.xlu0 %v624_v27  ;;  %s594_s8 = sshll.u32 %s731_s19, 3  ;;  %vm500_vm5 = vcmask 7168  }
   0xd   : > { %s225_s23 = scalar_lea.vmem %s724_s0, %s598_s20  ;;  %v680_v18 = vand.u32 4294901760, %v287_v13  ;;  %v491_v57 = vld [vmem:[%s727_s3] sm:$0x1]  ;;  %s229_s11 = scalar_lea.vmem %s728_s4, %s594_s8 }
   0xe   : > { %v267_v0 = vld [vmem:[%s225_s23] sm:$0xf]  ;;  %v237_v2 = vld [vmem:[%s225_s23 + $0x4] sm:$0xf]  ;;  %v245_v4 = vld [vmem:[%s225_s23 + $0x8] sm:$0xf]  ;;  %s233_s14 = scalar_lea.vmem %s729_s5, %s594_s8 }
   0xf   : > { %v234_v1 = vld [vmem:[%s225_s23] sm:$0xf]  ;;  %269 = vrot.lane.b32.xlu0 %v267_v0, %s621_s24  ;;  %v261_v3 = vld [vmem:[%s225_s23 + $0x4] sm:$0xf]  ;;  %v247_v6 = vld [vmem:[%s225_s23 + $0xc] sm:$0xf]  ;;  %v315_v26 = vsub.f32 %v287_v13, %v680_v18 }
  0x10   : > { %263 = vrot.lane.b32.xlu1 %v261_v3, %s622_s25  ;;  %v239_v5 = vld [vmem:[%s225_s23] sm:$0xf]  ;;  %236 = vst.msk [vmem:[#allocation2] sm:$0xf] %vm235_vm0, %v234_v1  ;;  %v249_v8 = vld [vmem:[%s225_s23 + $0x8] sm:$0xf] }
  0x11   : > { %241 = vrot.lane.b32.xlu2 %v239_v5, %s623_s26  ;;  %238 = vst.msk [vmem:[#allocation2 + $0x4] sm:$0xf] %vm235_vm0, %v237_v2  ;;  %v255_v7 = vld [vmem:[%s225_s23] sm:$0xf]  ;;  %v316_v35 = vand.u32 4294901760, %v315_v26  ;;  %vm492_vm3 = vcmp.gt.f32.partialorder %v491_v57, 0.5 }
  0x12   : > { %246 = vst.msk [vmem:[#allocation2 + $0xc] sm:$0xf] %vm235_vm0, %v245_v4  ;;  %v494_v63 = vsel %vm492_vm3, 1, %v624_v27 }
  0x13   : > { %248 = vst.msk [vmem:[#allocation2 + $0x10] sm:$0xf] %vm235_vm0, %v247_v6  ;;  %v317_v42 = vsub.f32 %v315_v26, %v316_v35  ;;  %v495_v2 = vperm.slane %v494_v63, 0 }
  0x15   : > { %v318_v49 = vand.u32 4294901760, %v317_v42  ;;  %vm496_vm4 = vcmp.eq.s32.totalorder %v495_v2, 1 }
  0x17   : > { %257 = vrot.lane.b32.xlu0 %v255_v7, %s622_s25 }
  0x18   : > { %251 = vrot.lane.b32.xlu1 %v249_v8, %s623_s26  ;;  %v274_v21 = vld [vmem:[#allocation2] sm:$0xff] }
  0x19   : > { %v693_v25 = vand.u32 4294901760, %v274_v21  ;;  %282 = vperm.xlu2 %611, %v279_v22  }
  0x1b   : > { %v359_v34 = vsub.f32 %v274_v21, %v693_v25 }
  0x1d   : > { %v360_v43 = vand.u32 4294901760, %v359_v34 }
  0x1f   : > { %v361_v50 = vsub.f32 %v359_v34, %v360_v43 }
  0x21   : > { %v362_v53 = vand.u32 4294901760, %v361_v50 }
  0x6b   : > { %v242_v9 = vpop.permute.xlu2 %241 }
  0x6c   : > { %244 = vst.msk [vmem:[#allocation2 + $0x8] sm:$0xf] %vm235_vm0, %v242_v9 }
  0x73   : > { %v275_v20 = vld [vmem:[#allocation2 + $0x8] sm:$0xff]  ;;  %v283_v54 = vpop.permute.xlu2 %282 }
  0x74   : > { %v691_v24 = vand.u32 4294901760, %v275_v20 }
  0x76   : > { %v353_v33 = vsub.f32 %v275_v20, %v691_v24 }
  0x78   : > { %v354_v41 = vand.u32 4294901760, %v353_v33 }
  0x7a   : > { %v355_v48 = vsub.f32 %v353_v33, %v354_v41 }
  0x7c   : > { %v356_v52 = vand.u32 4294901760, %v355_v48 }
  0x81   : > { %v270_v10 = vpop.permute.xlu0 %269 }
  0x82   : > { %272 = vst.msk [vmem:[#allocation2 + $0x20] sm:$0xf] %vm235_vm0, %v270_v10  ;;  %v264_v11 = vpop.permute.xlu1 %263 }
  0x83   : > { %266 = vst.msk [vmem:[#allocation2 + $0x1c] sm:$0xf] %vm235_vm0, %v264_v11 }
  0x89   : > { %v258_v14 = vpop.permute.xlu0 %257  ;;  %v278_v15 = vld [vmem:[#allocation2 + $0x20] sm:$0xf] }
  0x8a   : > { %260 = vst.msk [vmem:[#allocation2 + $0x18] sm:$0xf] %vm235_vm0, %v258_v14  ;;  %v252_v16 = vpop.permute.xlu1 %251  ;;  %v291_v17 = vsel %vm289_vm2, %v278_v15, 0 }
  0x8b   : > { %254 = vst.msk [vmem:[#allocation2 + $0x14] sm:$0xf] %vm235_vm0, %v252_v16  ;;  %v683_v19 = vand.u32 4294901760, %v291_v17 }
  0x8d   : > { %305 = vmatpush.msra.mxu0 %v683_v19  ;;  %413 = vmatpush.msra.mxu3 %v683_v19  ;;  %v335_v23 = vsub.f32 %v291_v17, %v683_v19 }
  0x8f   : > { %382 = vmatpush.msra.mxu2 %v335_v23  ;;  %v336_v28 = vand.u32 4294901760, %v335_v23 }
  0x91   : > { %v277_v29 = vld [vmem:[#allocation2 + $0x18] sm:$0xff]  ;;  %v337_v30 = vsub.f32 %v335_v23, %v336_v28 }
  0x92   : > { %v306_v31 = vand.u32 4294901760, %v277_v29  ;;  %v276_v32 = vld [vmem:[#allocation2 + $0x10] sm:$0xff] }
  0x93   : > { %v338_v36 = vand.u32 4294901760, %v337_v30  ;;  %v308_v37 = vand.u32 4294901760, %v276_v32 }
  0x94   : > { %307 = vmatpush.msra.mxu0 %v306_v31  ;;  %415 = vmatpush.msra.mxu3 %v306_v31  ;;  %v341_v38 = vsub.f32 %v277_v29, %v306_v31 }
  0x95   : > { %339 = vmatpush.msra.mxu1 %v338_v36  ;;  %v347_v39 = vsub.f32 %v276_v32, %v308_v37 }
  0x96   : > { %309 = vmatpush.msra.mxu0 %v308_v37  ;;  %385 = vmatpush.msra.mxu2 %v341_v38  ;;  %v342_v40 = vand.u32 4294901760, %v341_v38 }
  0x97   : > { %417 = vmatpush.msra.mxu3 %v308_v37  ;;  %v348_v44 = vand.u32 4294901760, %v347_v39 }
  0x98   : > { %311 = vmatpush.msra.mxu0 %v691_v24  ;;  %388 = vmatpush.msra.mxu2 %v347_v39  ;;  %v343_v45 = vsub.f32 %v341_v38, %v342_v40 }
  0x99   : > { %419 = vmatpush.msra.mxu3 %v691_v24  ;;  %v349_v46 = vsub.f32 %v347_v39, %v348_v44 }
  0x9a   : > { %313 = vmatpush.msra.mxu0 %v693_v25  ;;  %391 = vmatpush.msra.mxu2 %v353_v33  ;;  %v344_v47 = vand.u32 4294901760, %v343_v45 }
  0x9b   : > { %421 = vmatpush.msra.mxu3 %v693_v25  ;;  %v350_v51 = vand.u32 4294901760, %v349_v46  ;;  %319 = vmatmul.f32.vlgmr.msra.gmra.mxu0 %v318_v49 }
  0x9c   : > { %443 = vmatpush.msrb.mxu0 %v336_v28  ;;  %345 = vmatpush.msra.mxu1 %v344_v47 }
  0x9d   : > { %394 = vmatpush.msra.mxu2 %v359_v34  ;;  %425 = vmatmul.f32.vlgmr.msra.gmra.mxu3 %v316_v35 }
  0x9e   : > { %447 = vmatpush.msrb.mxu0 %v342_v40  ;;  %397 = vmatmul.f32.vlgmr.msra.gmra.mxu2 %v315_v26 }
  0x9f   : > { %351 = vmatpush.msra.mxu1 %v350_v51 }
  0xa0   : > { %451 = vmatpush.msrb.mxu0 %v348_v44 }
  0xa1   : > { %357 = vmatpush.msra.mxu1 %v356_v52 }
  0xa2   : > { %455 = vmatpush.msrb.mxu0 %v354_v41 }
  0xa3   : > { %363 = vmatpush.msra.mxu1 %v362_v53 }
  0xa4   : > { %459 = vmatpush.msrb.mxu0 %v360_v43  ;;  %365 = vmatmul.f32.vlgmr.msra.gmra.mxu1 %v680_v18 }
  0xa5   : > { %477 = vmatpush.msrb.mxu1 %v683_v19  ;;  %461 = vmatmul.f32.vlgmr.msrb.gmra.mxu0 %v680_v18 }
  0xa7   : > { %479 = vmatpush.msrb.mxu1 %v306_v31 }
  0xa9   : > { %481 = vmatpush.msrb.mxu1 %v308_v37 }
  0xab   : > { %483 = vmatpush.msrb.mxu1 %v691_v24 }
  0xad   : > { %485 = vmatpush.msrb.mxu1 %v693_v25 }
  0xae   : > { %487 = vmatmul.f32.vlgmr.msrb.gmra.mxu1 %v680_v18 }
 0x118   : > { %v320_v55 = vpop.f32.mrf.mxu0 }
 0x119   : > { %v321_v56 = vadd.f32 %v320_v55, %v283_v54 }
 0x120   : > { %v426_v61 = vpop.f32.mrf.mxu3 }
 0x121   : > { %v366_v58 = vpop.f32.mrf.mxu1  ;;  %v398_v59 = vpop.f32.mrf.mxu2 }
 0x122   : > { %v367_v60 = vadd.f32 %v366_v58, %v321_v56  ;;  %v462_v0 = vpop.f32.mrf.mxu0 }
 0x124   : > { %v399_v62 = vadd.f32 %v398_v59, %v367_v60 }
 0x126   : > { %v427_v1 = vadd.f32 %v426_v61, %v399_v62 }
 0x128   : > { %v463_v3 = vadd.f32 %v462_v0, %v427_v1 }
 0x12b   : > { %v488_v4 = vpop.f32.mrf.mxu1 }
 0x12c   : > { %v489_v5 = vadd.f32 %v488_v4, %v463_v3 }
 0x12e   : > { %502 = vst [vmem:[%s229_s11] sm:$0xff] %v489_v5  ;;  %v493_v6 = vmul.f32 %v489_v5, %v489_v5 }
 0x130   : > { %v497_v7 = vsel %vm496_vm4, %v493_v6, 0.0 }
 0x131   : > { %498 = vadd.xlane.f32.xlu0 %v497_v7 }
 0x1a4   : > { %v499_v8 = vpop.xlane.xlu0 %498 }
 0x1a5   : > { %501 = vst.msk [vmem:[%s233_s14] sm:$0xff] %vm500_vm5, %v499_v8 }
 0x1a6 PF: > { %s16_s18 = sadd.s32 1, %s619_s18  }
 0x1a7   : > { %p13_p4 = scmp.ge.s32.totalorder %s16_s18, 4  }
 0x1a9   :  { %15 = sbr.rel (!%p13_p4) target bundleno = 1 (0x1), region = 78 }

</bundles_post_ra>
